<compile_context>
chip_gen: v7x
topology: tpu7x:2x2x1
jax: 0.10.0
libtpu: 0.0.40
codegen_flags: <defaults>
</compile_context>

<pallas_src>
import jax
import jax.numpy as jnp
from jax.experimental import pallas as pl
from jax.experimental.pallas import tpu as pltpu


def _make_basic_block_kernel(G, Dw, Wq, Wo, Ho, norm, eps=1e-5, slope=0.2):
    """Fused conv (tap-group matmuls) + InstanceNorm + LeakyReLU kernel body."""
    HoWq = Ho * Wq
    inv_cnt = 1.0 / float(Ho * Wo)

    def conv_groups(x_ref, w_ref):
        # x_ref: (K = s*s*C_in, L)   phase-decomposed input (rows = (pi,pj,c))
        # w_ref: (G, C_out, K)       tap-group weights
        acc = None
        for g in range(G):                      # G = Dh*Dw small static loop
            di, dj = divmod(g, Dw)
            off = di * Wq + dj                  # static lane offset per group
            x_g = x_ref[:, off:off + HoWq]      # (K, Ho*Wq) contiguous lanes
            r = jnp.dot(w_ref[g], x_g, preferred_element_type=jnp.float32)
            acc = r if acc is None else acc + r
        return acc                              # (C_out, Ho*Wq) f32, in vregs

    if norm:
        def kernel(x_ref, w_ref, o_ref):
            acc = conv_groups(x_ref, w_ref)
            # Single-pass masked stats over the live value (junk columns
            # wo in [Wo, Wq) are excluded; all statistics stay in f32).
            col = jax.lax.broadcasted_iota(jnp.int32, acc.shape, 1)
            valid = (col % Wq) < Wo
            zero = jnp.zeros_like(acc)
            s1 = jnp.sum(jnp.where(valid, acc, zero), axis=1, keepdims=True)
            s2 = jnp.sum(jnp.where(valid, acc * acc, zero), axis=1,
                         keepdims=True)
            mean = s1 * inv_cnt
            var = jnp.maximum(s2 * inv_cnt - mean * mean, 0.0)
            y = (acc - mean) * jax.lax.rsqrt(var + eps)
            o_ref[...] = jnp.where(y >= 0, y, slope * y).astype(o_ref.dtype)
    else:
        def kernel(x_ref, w_ref, b_ref, o_ref):
            acc = conv_groups(x_ref, w_ref)
            y = acc + b_ref[...]                # bias matters without norm
            o_ref[...] = jnp.where(y >= 0, y, slope * y).astype(o_ref.dtype)

    return kernel


def basic_block(x, weight, bias=None, *, stride=2, padding=1, norm=True,
                mxu_dtype=jnp.float32, negative_slope=0.2, eps=1e-5):
    """x: (N,C_in,H,W) f32; weight: (C_out,C_in,kh,kw); bias: (C_out,).

    mxu_dtype=jnp.bfloat16 is an explicit opt-in for faster MXU operands
    (accumulation and InstanceNorm statistics remain f32 either way)."""
    N, C_in, H, W = x.shape
    C_out, C_in_w, kh, kw = weight.shape
    assert C_in_w == C_in
    s, p = int(stride), int(padding)

    Hp0, Wp0 = H + 2 * p, W + 2 * p
    Ho = (Hp0 - kh) // s + 1
    Wo = (Wp0 - kw) // s + 1
    Dh, Dw = -(-kh // s), -(-kw // s)        # tap groups along H / W
    Hq, Wq = -(-Hp0 // s), -(-Wp0 // s)      # phase-decomposed extents
    off_max = (Dh - 1) * Wq + (Dw - 1)
    # Pad H far enough that every group's lane slice [off, off+Ho*Wq) stays
    # inside the flattened (Hq*Wq) axis; the extra rows are zeros and are
    # never read for valid outputs.
    Hq = max(Hq, -(-(off_max + Ho * Wq) // Wq))
    L = Hq * Wq
    K = s * s * C_in
    G = Dh * Dw

    # Single spatial pad (top/left = p, bottom/right = alignment zeros), then
    # phase decomposition (a 1x-data relayout; XLA fuses pad+transpose+cast):
    #   xq[n, (pi*s+pj)*C_in + c, hb*Wq + wb] = xp[n, c, s*hb + pi, s*wb + pj]
    xp = jnp.pad(x, ((0, 0), (0, 0),
                     (p, Hq * s - H - p),
                     (p, Wq * s - W - p)))
    xq = (xp.reshape(N, C_in, Hq, s, Wq, s)
            .transpose(0, 3, 5, 1, 2, 4)
            .reshape(N, K, L)
            .astype(mxu_dtype))

    # Tap-group weights (zero-padded past kh/kw so every group has s*s taps):
    #   wg[di*Dw + dj, co, (pi*s+pj)*C_in + c] = weight[co, c, s*di+pi, s*dj+pj]
    w_pad = jnp.zeros((C_out, C_in, Dh * s, Dw * s), weight.dtype)
    w_pad = w_pad.at[:, :, :kh, :kw].set(weight)
    wg = (w_pad.reshape(C_out, C_in, Dh, s, Dw, s)
               .transpose(2, 4, 0, 3, 5, 1)
               .reshape(G, C_out, K)
               .astype(mxu_dtype))

    kernel = _make_basic_block_kernel(G, Dw, Wq, Wo, Ho, norm,
                                      eps, negative_slope)

    in_specs = [
        pl.BlockSpec((pl.Squeezed(), K, L), lambda n: (n, 0, 0)),
        pl.BlockSpec((G, C_out, K), lambda n: (0, 0, 0)),    # resident weights
    ]
    args = [xq, wg]
    if not norm:
        b2d = (bias if bias is not None
               else jnp.zeros((C_out,), jnp.float32)).astype(jnp.float32)
        in_specs.append(pl.BlockSpec((C_out, 1), lambda n: (0, 0)))
        args.append(b2d.reshape(C_out, 1))

    out = pl.pallas_call(
        kernel,
        out_shape=jax.ShapeDtypeStruct((N, C_out, Ho * Wq), jnp.float32),
        grid_spec=pltpu.PrefetchScalarGridSpec(
            num_scalar_prefetch=0,
            grid=(N,),
            in_specs=in_specs,
            out_specs=pl.BlockSpec((pl.Squeezed(), C_out, Ho * Wq),
                                   lambda n: (n, 0, 0)),
        ),
        compiler_params=pltpu.CompilerParams(
            dimension_semantics=("parallel",),
        ),
    )(*args)

    # Drop the (Wq - Wo) junk columns per output row (small output-side copy).
    return out.reshape(N, C_out, Ho, Wq)[:, :, :, :Wo]


if __name__ == "__main__":
    key = jax.random.PRNGKey(0)
    k_x, k_w, k_b = jax.random.split(key, 3)

    N, C_in, H, W = 2, 4, 16, 16
    C_out, kh, kw = 8, 4, 4

    x = jax.random.normal(k_x, (N, C_in, H, W), dtype=jnp.float32)
    fan_in = C_in * kh * kw
    bound = 1.0 / (fan_in ** 0.5)
    weight = jax.random.uniform(k_w, (C_out, C_in, kh, kw),
                                minval=-bound, maxval=bound, dtype=jnp.float32)
    bias = jax.random.uniform(k_b, (C_out,), minval=-bound, maxval=bound,
                              dtype=jnp.float32)

    # Default (exact f32-operand) path.
    out = jax.block_until_ready(
        basic_block(x, weight, bias, stride=2, padding=1))
    assert out.shape == (N, C_out, 8, 8), out.shape

    # Pure-JAX reference: conv + bias -> InstanceNorm2d(affine=False) -> LeakyReLU(0.2).
    conv = jax.lax.conv_general_dilated(
        x, weight, window_strides=(2, 2), padding=[(1, 1), (1, 1)],
        dimension_numbers=("NCHW", "OIHW", "NCHW")) + bias[None, :, None, None]
    mean = conv.mean(axis=(2, 3), keepdims=True)
    var = ((conv - mean) ** 2).mean(axis=(2, 3), keepdims=True)
    yn = (conv - mean) * jax.lax.rsqrt(var + 1e-5)
    ref = jnp.where(yn >= 0, yn, 0.2 * yn)
    assert float(jnp.max(jnp.abs(out - ref))) < 1e-3

    # norm=False path (conv + bias -> LeakyReLU).
    out_nn = jax.block_until_ready(
        basic_block(x, weight, bias, stride=2, padding=1, norm=False))
    ref_nn = jnp.where(conv >= 0, conv, 0.2 * conv)
    assert float(jnp.max(jnp.abs(out_nn - ref_nn))) < 1e-3

    # bf16 MXU-operand opt-in (looser tolerance; stats stay f32).
    out_bf = jax.block_until_ready(
        basic_block(x, weight, bias, stride=2, padding=1,
                    mxu_dtype=jnp.bfloat16))
    assert float(jnp.max(jnp.abs(out_bf - ref))) < 1e-1

    print("KERNEL_OK")
</pallas_src>

<mosaic_0001>
module attributes {stable_mosaic.version = 11 : i64} {
  func.func @kernel(%arg0: i32, %arg1: memref<1x16x90xf32, #tpu.memory_space<vmem>>, %arg2: memref<4x8x16xf32, #tpu.memory_space<vmem>>, %arg3: memref<1x8x72xf32, #tpu.memory_space<vmem>>) attributes {dimension_semantics = [#tpu.dimension_semantics<parallel>], iteration_bounds = array<i64: 2>, scalar_prefetch = 0 : i64, scratch_operands = 0 : i64, tpu.core_type = #tpu.core_type<tc>, window_params = [{transform_indices = @transform_0, window_bounds = array<i64: 1, 16, 90>}, {pipeline_mode = #tpu.pipeline_mode<synchronous>, transform_indices = @transform_1, window_bounds = array<i64: 4, 8, 16>}, {transform_indices = @transform_2, window_bounds = array<i64: 1, 8, 72>}]} {
    %c0 = arith.constant 0 : index
    %c0_0 = arith.constant 0 : index
    %c0_1 = arith.constant 0 : index
    %0 = vector.load %arg1[%c0, %c0_0, %c0_1] : memref<1x16x90xf32, #tpu.memory_space<vmem>>, vector<1x16x72xf32>
    %1 = vector.shape_cast %0 : vector<1x16x72xf32> to vector<16x72xf32>
    %c0_2 = arith.constant 0 : index
    %c0_3 = arith.constant 0 : index
    %c0_4 = arith.constant 0 : index
    %2 = vector.load %arg2[%c0_2, %c0_3, %c0_4] : memref<4x8x16xf32, #tpu.memory_space<vmem>>, vector<1x8x16xf32>
    %3 = vector.shape_cast %2 : vector<1x8x16xf32> to vector<8x16xf32>
    %cst = arith.constant dense<0.000000e+00> : vector<8x72xf32>
    %4 = tpu.matmul %3, %1, %cst {dimension_numbers = #tpu.dot_dimension_numbers<[1], [0], [0], [1], [0, 0, 1, 1], [], []>} : vector<8x16xf32>, vector<16x72xf32>, vector<8x72xf32> -> vector<8x72xf32>
    %c0_5 = arith.constant 0 : index
    %c0_6 = arith.constant 0 : index
    %c1 = arith.constant 1 : index
    %5 = vector.load %arg1[%c0_5, %c0_6, %c1] : memref<1x16x90xf32, #tpu.memory_space<vmem>>, vector<1x16x72xf32>
    %6 = vector.shape_cast %5 : vector<1x16x72xf32> to vector<16x72xf32>
    %c1_7 = arith.constant 1 : index
    %c0_8 = arith.constant 0 : index
    %c0_9 = arith.constant 0 : index
    %7 = vector.load %arg2[%c1_7, %c0_8, %c0_9] : memref<4x8x16xf32, #tpu.memory_space<vmem>>, vector<1x8x16xf32>
    %8 = vector.shape_cast %7 : vector<1x8x16xf32> to vector<8x16xf32>
    %cst_10 = arith.constant dense<0.000000e+00> : vector<8x72xf32>
    %9 = tpu.matmul %8, %6, %cst_10 {dimension_numbers = #tpu.dot_dimension_numbers<[1], [0], [0], [1], [0, 0, 1, 1], [], []>} : vector<8x16xf32>, vector<16x72xf32>, vector<8x72xf32> -> vector<8x72xf32>
    %10 = arith.addf %4, %9 : vector<8x72xf32>
    %c0_11 = arith.constant 0 : index
    %c0_12 = arith.constant 0 : index
    %c9 = arith.constant 9 : index
    %11 = vector.load %arg1[%c0_11, %c0_12, %c9] : memref<1x16x90xf32, #tpu.memory_space<vmem>>, vector<1x16x72xf32>
    %12 = vector.shape_cast %11 : vector<1x16x72xf32> to vector<16x72xf32>
    %c2 = arith.constant 2 : index
    %c0_13 = arith.constant 0 : index
    %c0_14 = arith.constant 0 : index
    %13 = vector.load %arg2[%c2, %c0_13, %c0_14] : memref<4x8x16xf32, #tpu.memory_space<vmem>>, vector<1x8x16xf32>
    %14 = vector.shape_cast %13 : vector<1x8x16xf32> to vector<8x16xf32>
    %cst_15 = arith.constant dense<0.000000e+00> : vector<8x72xf32>
    %15 = tpu.matmul %14, %12, %cst_15 {dimension_numbers = #tpu.dot_dimension_numbers<[1], [0], [0], [1], [0, 0, 1, 1], [], []>} : vector<8x16xf32>, vector<16x72xf32>, vector<8x72xf32> -> vector<8x72xf32>
    %16 = arith.addf %10, %15 : vector<8x72xf32>
    %c0_16 = arith.constant 0 : index
    %c0_17 = arith.constant 0 : index
    %c10 = arith.constant 10 : index
    %17 = vector.load %arg1[%c0_16, %c0_17, %c10] : memref<1x16x90xf32, #tpu.memory_space<vmem>>, vector<1x16x72xf32>
    %18 = vector.shape_cast %17 : vector<1x16x72xf32> to vector<16x72xf32>
    %c3 = arith.constant 3 : index
    %c0_18 = arith.constant 0 : index
    %c0_19 = arith.constant 0 : index
    %19 = vector.load %arg2[%c3, %c0_18, %c0_19] : memref<4x8x16xf32, #tpu.memory_space<vmem>>, vector<1x8x16xf32>
    %20 = vector.shape_cast %19 : vector<1x8x16xf32> to vector<8x16xf32>
    %cst_20 = arith.constant dense<0.000000e+00> : vector<8x72xf32>
    %21 = tpu.matmul %20, %18, %cst_20 {dimension_numbers = #tpu.dot_dimension_numbers<[1], [0], [0], [1], [0, 0, 1, 1], [], []>} : vector<8x16xf32>, vector<16x72xf32>, vector<8x72xf32> -> vector<8x72xf32>
    %22 = arith.addf %16, %21 : vector<8x72xf32>
    %23 = tpu.iota {dimensions = array<i32: 1>} : vector<8x72xi32>
    %c9_i32 = arith.constant 9 : i32
    %c0_i32 = arith.constant 0 : i32
    %24 = arith.cmpi eq, %c9_i32, %c0_i32 : i32
    %c1_i32 = arith.constant 1 : i32
    %25 = arith.select %24, %c1_i32, %c9_i32 : i32
    %26 = vector.broadcast %25 : i32 to vector<8x72xi32>
    %27 = arith.remsi %23, %26 : vector<8x72xi32>
    %c0_i32_21 = arith.constant 0 : i32
    %28 = vector.broadcast %c0_i32_21 : i32 to vector<8x72xi32>
    %29 = arith.cmpi ne, %27, %28 : vector<8x72xi32>
    %c0_i32_22 = arith.constant 0 : i32
    %30 = vector.broadcast %c0_i32_22 : i32 to vector<8x72xi32>
    %31 = arith.cmpi slt, %27, %30 : vector<8x72xi32>
    %c0_i32_23 = arith.constant 0 : i32
    %32 = arith.cmpi slt, %25, %c0_i32_23 : i32
    %33 = vector.broadcast %32 : i1 to vector<8x72xi1>
    %34 = vector.broadcast %33 : vector<8x72xi1> to vector<8x72xi1>
    %35 = arith.xori %31, %34 : vector<8x72xi1>
    %36 = arith.andi %35, %29 : vector<8x72xi1>
    %37 = vector.broadcast %25 : i32 to vector<8x72xi32>
    %38 = arith.addi %27, %37 : vector<8x72xi32>
    %39 = arith.select %36, %38, %27 : vector<8x72xi1>, vector<8x72xi32>
    %c8_i32 = arith.constant 8 : i32
    %40 = vector.broadcast %c8_i32 : i32 to vector<8x72xi32>
    %41 = arith.cmpi slt, %39, %40 : vector<8x72xi32>
    %cst_24 = arith.constant 0.000000e+00 : f32
    %42 = vector.broadcast %cst_24 : f32 to vector<8x72xf32>
    %43 = arith.select %41, %22, %42 : vector<8x72xi1>, vector<8x72xf32>
    %cst_25 = arith.constant dense<0.000000e+00> : vector<8xf32>
    %44 = vector.multi_reduction <add>, %43, %cst_25 [1] : vector<8x72xf32> to vector<8xf32>
    %45 = vector.shape_cast %44 : vector<8xf32> to vector<8x1xf32>
    %46 = arith.mulf %22, %22 : vector<8x72xf32>
    %47 = arith.select %41, %46, %42 : vector<8x72xi1>, vector<8x72xf32>
    %cst_26 = arith.constant dense<0.000000e+00> : vector<8xf32>
    %48 = vector.multi_reduction <add>, %47, %cst_26 [1] : vector<8x72xf32> to vector<8xf32>
    %49 = vector.shape_cast %48 : vector<8xf32> to vector<8x1xf32>
    %cst_27 = arith.constant 1.562500e-02 : f32
    %50 = vector.broadcast %cst_27 : f32 to vector<8x1xf32>
    %51 = arith.mulf %45, %50 : vector<8x1xf32>
    %cst_28 = arith.constant 1.562500e-02 : f32
    %52 = vector.broadcast %cst_28 : f32 to vector<8x1xf32>
    %53 = arith.mulf %49, %52 : vector<8x1xf32>
    %54 = arith.mulf %51, %51 : vector<8x1xf32>
    %55 = arith.subf %53, %54 : vector<8x1xf32>
    %cst_29 = arith.constant 0.000000e+00 : f32
    %56 = vector.broadcast %cst_29 : f32 to vector<8x1xf32>
    %57 = arith.maximumf %55, %56 : vector<8x1xf32>
    %58 = vector.broadcast %51 : vector<8x1xf32> to vector<8x72xf32>
    %59 = arith.subf %22, %58 : vector<8x72xf32>
    %cst_30 = arith.constant 9.99999974E-6 : f32
    %60 = vector.broadcast %cst_30 : f32 to vector<8x1xf32>
    %61 = arith.addf %57, %60 : vector<8x1xf32>
    %62 = math.rsqrt %61 : vector<8x1xf32>
    %63 = vector.broadcast %62 : vector<8x1xf32> to vector<8x72xf32>
    %64 = arith.mulf %59, %63 : vector<8x72xf32>
    %cst_31 = arith.constant 0.000000e+00 : f32
    %65 = vector.broadcast %cst_31 : f32 to vector<8x72xf32>
    %66 = arith.cmpf oge, %64, %65 : vector<8x72xf32>
    %cst_32 = arith.constant 2.000000e-01 : f32
    %67 = vector.broadcast %cst_32 : f32 to vector<8x72xf32>
    %68 = arith.mulf %67, %64 : vector<8x72xf32>
    %69 = arith.select %66, %64, %68 : vector<8x72xi1>, vector<8x72xf32>
    %c0_33 = arith.constant 0 : index
    %c0_34 = arith.constant 0 : index
    %c0_35 = arith.constant 0 : index
    %70 = vector.load %arg3[%c0_33, %c0_34, %c0_35] : memref<1x8x72xf32, #tpu.memory_space<vmem>>, vector<1x8x72xf32>
    %71 = vector.shape_cast %70 : vector<1x8x72xf32> to vector<8x72xf32>
    %72 = vector.shape_cast %69 : vector<8x72xf32> to vector<1x8x72xf32>
    tpu.vector_store %arg3[%c0_33, %c0_34, %c0_35], %72 {strides = array<i32>} : memref<1x8x72xf32, #tpu.memory_space<vmem>>, vector<1x8x72xf32>,
    return
  }
  func.func @transform_0(%arg0: i32) -> (i32, i32, i32) {
    %c0_i32 = arith.constant 0 : i32
    %c0_i32_0 = arith.constant 0 : i32
    %c0_i32_1 = arith.constant 0 : i32
    return %arg0, %c0_i32, %c0_i32_0 : i32, i32, i32
  }
  func.func @transform_1(%arg0: i32) -> (i32, i32, i32) {
    %c0_i32 = arith.constant 0 : i32
    %c0_i32_0 = arith.constant 0 : i32
    %c0_i32_1 = arith.constant 0 : i32
    %c0_i32_2 = arith.constant 0 : i32
    return %c0_i32, %c0_i32_0, %c0_i32_1 : i32, i32, i32
  }
  func.func @transform_2(%arg0: i32) -> (i32, i32, i32) {
    %c0_i32 = arith.constant 0 : i32
    %c0_i32_0 = arith.constant 0 : i32
    %c0_i32_1 = arith.constant 0 : i32
    return %arg0, %c0_i32, %c0_i32_0 : i32, i32, i32
  }
}

</mosaic_0001>

<bundles_post_ra>
// kernel: tpu_custom_call.1
= control target key start
LH: loop header
LB: loop body
LE: loop exit
PB: predicated region body
PF: predicated region fallthrough
CT: control target
= control target key end

     0   :  { %7 = vsyncpa [#allocation3], 0  ;;  %s1175_s0 = inlined_call_operand.hbm [shape: f32[2,16,90], index: 0, kind: input, shape index: {}]   ;;  %s1176_s1 = inlined_call_operand.hbm [shape: f32[4,8,16], index: 1, kind: input, shape index: {}]   ;;  %s1177_s2 = inlined_call_operand.hbm [shape: f32[2,8,72], index: 2, kind: output, shape index: {}]  }
   0x1   :  { %9 = vsyncpa [#allocation3 + $0x1], 0 }
   0x2   :  { %10 = vsyncpa [#allocation6], 0 }
   0x3   :  { %11 = vsyncpa [#allocation4], 0 }
   0x4   :  { %13 = vsyncpa [#allocation4 + $0x1], 0  ;;  %s954_s9 = smov 0   ;;  %s956_s10 = smov 0  }
   0x5   :  { %s958_s11 = smov 0   ;;  %s960_s12 = smov 0  }
   0x6 LB: > { %s975_s13 = sadd.s32 4294967295, %s926_s12   ;;  %s637_s14 = sadd.s32 4294967294, %s926_s12   ;;  %s926_s12 = sphi %s960_s12, %s1197_s12   ;;  %s922_s11 = sphi %s958_s11, %s1196_s11   ;;  %s918_s10 = sphi %s956_s10, %s1195_s10   ;;  %s914_s9 = sphi %s954_s9, %s1194_s9  }
   0x7   : > { %p39_p0 = scmp.ne.s32.totalorder %s918_s10, %s914_s9  ;;  %p1178_p1 = scmp.eq.s32.totalorder %s975_s13, 0 }
   0x8   : > { %p90_p3 = scmp.eq.s32.totalorder %s637_s14, 1  ;;  %p638_p5 = scmp.ge.s32.totalorder %s926_s12, 1 }
   0x9   : > { %p984_p4 = por %p1178_p1, %p39_p0  ;;  %p97_p7 = scmp.lt.s32.totalorder %s926_s12, 3 }
   0xa   : > { %p989_p6 = por %p90_p3, %p39_p0  ;;  %s928_s18 = smov [#allocation5]  }
   0xb   : > { %s1181_s15 = scalar_select %p984_p4, 1, 0 }
   0xc   : > { %s1182_s16 = scalar_select %p989_p6, 1, 0 }
   0xd   : > { %p994_p8 = pnand %p638_p5, %p97_p7  ;;  %s109_s19 = sshll.u32 %s928_s18, 4  ;;  %s998_s19 = int_to_ptr.vmem [resolvable:$true] %s109_s19 }
   0xe   : > { %s1010_s21 = sadd.s32 1, %s926_s12   ;;  %s26_s22 = sadd.s32 1, %s922_s11 }
   0xf   : > { %s1183_s17 = scalar_select %p994_p8, 1, 0 }
  0x10   : > { %p724_p9 = pneg %p994_p8  ;;  %s23_s23 = ssub.s32 %s926_s12, %s1010_s21 }
  0x11   : > { %s798_s26 = scalar_lea.hbm %s1176_s1, 512 }
  0x12   : > { %p1005_p11 = pnand %p724_p9, %p1178_p1  ;;  %p799_p12 = scmp.ne.s32.totalorder %s1176_s1, %s798_s26 }
  0x13   : > { %p805_p5 = scmp.lt.u32.totalorder %s798_s26, %s1176_s1 }
  0x14   : > { %p800_p13 = pneg %p1005_p11 }
  0x16   : > { %p801_p0 = pnand %p800_p13, %p799_p12 }
  0x18   : > { %p802_p3 = pneg %p801_p0 }
  0x1a   : > { %p807_p7 = pnand %p805_p5, %p802_p3 }
  0x1c   : > { %810 = shalt.err (!%p807_p7)
}
  0x1d   : > { %s811_s3 = scalar_lea.vmem %s998_s19, 512  ;;  %p819_p2 = scmp.lt.s32.totalorder %s998_s19, %s998_s19 }
  0x1e   : > { %p812_p9 = scmp.ne.s32.totalorder %s998_s19, %s811_s3  ;;  %p820_p6 = scmp.lt.s32.totalorder %s811_s3, %s811_s3 }
  0x20   : > { %p814_p10 = pnand %p812_p9, %p800_p13  ;;  %p821_p4 = por %p820_p6, %p819_p2 }
  0x22   : > { %p815_p1 = pneg %p814_p10 }
  0x24   : > { %p822_p8 = pnand %p821_p4, %p815_p1 }
  0x26   : > { %825 = shalt.err (!%p822_p8)
}
  0x27   : > { %s929_s4 = smov 128   ;;  %s930_s5 = smov 8  }
  0x28   : > { %727 = dma.hbm_to_vmem [thread:$0]  (!%p1005_p11), %s1176_s1, 512, %s998_s19, [#allocation6], %s929_s4, %s929_s4, %s930_s5  }
  0x29   : > { %p24_p1 = scmp.eq.s32.totalorder %s23_s23, 0  ;;  %p33_p2 = scmp.ne.s32.totalorder %s922_s11, %s918_s10 }
  0x2a   : > { %p34_p4 = scmp.eq.s32.totalorder %s926_s12, 0  ;;  %p737_p6 = scmp.lt.s32.totalorder %s926_s12, 2 }
  0x2b   : > { %s1044_s8 = scalar_select %p24_p1, %s922_s11, %s26_s22  }
  0x2c   : > { %p35_p8 = por %p34_p4, %p33_p2  ;;  %p1185_p10 = scmp.eq.s32.totalorder %s975_s13, 1 }
  0x2d   : > { %s123_s18 = sand.u32 1, %s922_s11   ;;  %s656_s20 = sshll.u32 %s926_s12, 8 }
  0x2e   : > { %p1048_p12 = por %p1185_p10, %p33_p2  ;;  %s641_s24 = sshll.u32 %s123_s18, 4 }
  0x2f   : > { %s1057_s27 = scalar_lea.hbm %s1175_s0, %s656_s20  ;;  %s127_s19 = scalar_lea.vmem [#allocation2], %s641_s24 }
  0x30   : > { %s134_s22 = sshll.u32 %s127_s19, 4  ;;  %p1059_p11 = pnand %p737_p6, %p35_p8  ;;  %s1063_s22 = int_to_ptr.vmem [resolvable:$true] %s134_s22 }
  0x31   : > { %s1065_s28 = scalar_lea.sflag [#allocation3], %s123_s18  ;;  %s826_s29 = scalar_lea.hbm %s1057_s27, 256 }
  0x32   : > { %p827_p13 = scmp.ne.s32.totalorder %s1057_s27, %s826_s29  ;;  %p828_p0 = pneg %p1059_p11 }
  0x33   : > { %s831_s6 = scalar_lea.hbm %s1175_s0, 512  ;;  %p832_p7 = scmp.lt.u32.totalorder %s1057_s27, %s1175_s0 }
  0x34   : > { %p829_p3 = pnand %p828_p0, %p827_p13  ;;  %p833_p9 = scmp.lt.u32.totalorder %s831_s6, %s826_s29 }
  0x35   : > { %p835_p2 = scmp.lt.u32.totalorder %s826_s29, %s1057_s27 }
  0x36   : > { %p830_p5 = pneg %p829_p3  ;;  %p834_p1 = por %p833_p9, %p832_p7 }
  0x38   : > { %p836_p4 = por %p835_p2, %p834_p1 }
  0x3a   : > { %p837_p6 = pnand %p836_p4, %p830_p5 }
  0x3c   : > { %840 = shalt.err (!%p837_p6)
}
  0x3d   : > { %s841_s18 = scalar_lea.vmem %s1063_s22, 256  ;;  %s931_s24 = smov [#allocation2]  }
  0x3e   : > { %p842_p8 = scmp.ne.s32.totalorder %s1063_s22, %s841_s18  ;;  %s846_s25 = sshll.u32 %s931_s24, 4  ;;  %s847_s25 = int_to_ptr.vmem [resolvable:$false] %s846_s25 }
  0x3f   : > { %s848_s26 = scalar_lea.vmem %s847_s25, 512  ;;  %p849_p3 = scmp.lt.s32.totalorder %s1063_s22, %s847_s25 }
  0x40   : > { %p844_p10 = pnand %p842_p8, %p828_p0  ;;  %p850_p7 = scmp.lt.s32.totalorder %s848_s26, %s841_s18 }
  0x42   : > { %p845_p13 = pneg %p844_p10  ;;  %p851_p9 = por %p850_p7, %p849_p3 }
  0x44   : > { %p852_p1 = pnand %p851_p9, %p845_p13 }
  0x46   : > { %855 = shalt.err (!%p852_p1)
}
  0x47   : > { %731 = dma.hbm_to_vmem [thread:$0]  (!%p1059_p11), %s1057_s27, 256, %s1063_s22, %s1065_s28, %s929_s4, %s929_s4, %s930_s5  }
  0x48   : > { %p1188_p0 = scmp.ne.s32.totalorder %s1183_s17, 0 }
  0x49   : > { %s1099_s19 = sand.u32 (!%p1188_p0), 1, %s918_s10   ;;  %p1189_p5 = scmp.ne.s32.totalorder (!%p1188_p0), %s1181_s15, 0 }
  0x4a   : > { %146 = sbr.rel (%p1188_p0) target bundleno = 620 (0x26c), region = 28  ;;  %s645_s29 = sshll.u32 (!%p1188_p0), %s1099_s19, 4 }
  0x4b   : > { %s149_s30 = scalar_lea.sflag (!%p1188_p0), [#allocation3], %s1099_s19  ;;  %s152_s3 = scalar_lea.vmem (!%p1188_p0), [#allocation2], %s645_s29 }
  0x51   : > { %901 = dma.done.wait (%p1189_p5), %s149_s30, 256  }
  0x52   : > { %903 = vsyncadd (%p1189_p5), %s149_s30, 4294967040  ;;  %p1190_p2 = scmp.eq.s32.totalorder %s975_s13, 0 }
  0x54   : > { %905 = dma.done.wait (%p1190_p2), [#allocation6], 512   ;;  %p1191_p11 = pmov %p1190_p2 }
  0x55   : > { %v932_v0 = vmov 0.0|0.0   ;;  %vm933_vm0 = vmmov 0   ;;  %v934_v1 = vmov 0.0   ;;  %v177_v2 = vld [vmem:[%s152_s3] sm:$0xff]  ;;  %v178_v3 = vld [vmem:[%s152_s3 + $0x8] sm:$0xff]  ;;  %s935_s15 = smov 127   ;;  %v501_v22 = vlaneseq }
  0x56   : > { %907 = vsyncadd (%p1191_p11), [#allocation6], 4294966784  ;;  %697 = vmatprep.subr.bf16.mxu1 %v932_v0  ;;  %703 = vmatprep.subr.bf16.mxu0 %v932_v0  ;;  %v781_v4 = vpack.i.bf16 %v178_v3, %v177_v2  ;;  %v701_v5 = vpack.c.bf16 %v178_v3, %v177_v2  ;;  %s936_s17 = smov 118   ;;  %s937_s4 = smov 119   ;;  %vm190_vm1 = vcmask 130048   ;;  %v181_v16 = vld [vmem:[#allocation5 + $0x8] sm:$0xff] }
  0x57   : > { %673 = vmatprep.mubr.msk.f32.mxu1 %vm933_vm0, %v934_v1  ;;  %687 = vmatprep.mubr.msk.f32.mxu0 %vm933_vm0, %v934_v1  ;;  %v338_v19 = vld [vmem:[#allocation5 + $0x10] sm:$0xff]  ;;  %v179_v20 = vld [vmem:[#allocation5] sm:$0xff]  ;;  %v420_v21 = vld [vmem:[#allocation5 + $0x18] sm:$0xff]  ;;  %v502_v23 = vand.u32 127, %v501_v22  ;;  %vm521_vm6 = vcmask 588800   ;;  %s647_s5 = sshll.u32 %s1099_s19, 3 }
  0x58   : > { %782 = vrot.lane.b32.xlu0 %v781_v4, %s935_s15  ;;  %792 = vrot.lane.b32.xlu1 %v781_v4, %s936_s17  ;;  %s653_s27 = sshll.u32 %s975_s13, 7  ;;  %s176_s22 = scalar_lea.vmem [#allocation7], %s647_s5 }
  0x59   : > { %v1119_v24 = vmul.u32.u64.low 3817748708, %v502_v23  ;;  %v1120_v25 = vmul.u32.u64.high 3817748708, %v502_v23, %v1119_v24  ;;  %s557_s23 = sshll.u32 %s176_s22, 4  ;;  %s1130_s7 = scalar_lea.hbm %s1177_s2, %s653_s27  ;;  %s1132_s23 = int_to_ptr.vmem [resolvable:$true] %s557_s23 }
  0x5a   : > { %s544_s20 = scalar_lea.sflag [#allocation4], %s1099_s19  ;;  %s856_s18 = scalar_lea.vmem %s1132_s23, 128 }
  0x5b   : > { %v509_v26 = vshrl.u32 %v1120_v25, 3  ;;  %p857_p4 = scmp.ne.s32.totalorder %s1132_s23, %s856_s18  ;;  %s938_s13 = smov [#allocation7]  }
  0x5c   : > { %787 = vrot.lane.b32.xlu0 %v781_v4, %s937_s4  ;;  %s860_s24 = sshll.u32 %s938_s13, 4  ;;  %s861_s24 = int_to_ptr.vmem [resolvable:$false] %s860_s24 }
  0x5d   : > { %v510_v27 = vmul.u32 9, %v509_v26  ;;  %p858_p6 = pnand %p857_p4, %p1048_p12  ;;  %s862_s25 = scalar_lea.vmem %s861_s24, 256 }
  0x5e   : > { %p863_p10 = scmp.lt.s32.totalorder %s1132_s23, %s861_s24  ;;  %p864_p13 = scmp.lt.s32.totalorder %s862_s25, %s856_s18 }
  0x5f   : > { %v511_v28 = vsub.s32 %v502_v23, %v510_v27  ;;  %p859_p8 = pneg %p858_p6 }
  0x60   : > { %p865_p3 = por %p864_p13, %p863_p10 }
  0x61   : > { %vm514_vm2 = vcmp.ne.s32.totalorder %v511_v28, 0  ;;  %vm515_vm3 = vcmp.lt.s32.totalorder %v511_v28, 0  ;;  %v517_v29 = vadd.s32 9, %v511_v28 }
  0x62   : > { %vm516_vm4 = vmand %vm515_vm3, %vm514_vm2  ;;  %p866_p7 = pnand %p865_p3, %p859_p8 }
  0x63   : > { %v518_v32 = vsel %vm516_vm4, %v517_v29, %v511_v28 }
  0x64   : > { %vm519_vm5 = vcmp.lt.s32.totalorder %v518_v32, 8 }
  0xca   : > { %v783_v6 = vpop.permute.xlu0 %782  ;;  %v793_v9 = vpop.permute.xlu1 %792 }
  0xcb   : > { %v785_v7 = vunpack.i.h.bf16 %v783_v6  ;;  %v784_v8 = vunpack.i.l.bf16 %v783_v6  ;;  %v795_v14 = vunpack.i.h.bf16 %v793_v9  ;;  %v794_v15 = vunpack.i.l.bf16 %v793_v9 }
  0xcd   : > { %v698_v10 = vpack.c.bf16 %v785_v7, %v784_v8  ;;  %v707_v18 = vpack.c.bf16 %v795_v14, %v794_v15 }
  0xce   : > { %v788_v11 = vpop.permute.xlu0 %787 }
  0xcf   : > { %v790_v12 = vunpack.i.h.bf16 %v788_v11  ;;  %v789_v13 = vunpack.i.l.bf16 %v788_v11  ;;  %699 = vmatpush3.bf16.msra.mxu1 %v698_v10 }
  0xd0   : > { %700 = vmatprep.subr.bf16.mxu1 %v932_v0 }
  0xd1   : > { %v704_v17 = vpack.c.bf16 %v790_v12, %v789_v13 }
  0xd2   : > { %674 = vmatmul.mubr.msk.f32.vlgmr.msra.gmra.mrb[0].mxu1 %vm190_vm1, %v181_v16 }
  0xd3   : > { %705 = vmatpush3.bf16.msra.mxu0 %v704_v17  ;;  %702 = vmatpush3.bf16.msra.mxu1 %v701_v5 }
  0xd4   : > { %706 = vmatprep.subr.bf16.mxu0 %v932_v0  ;;  %680 = vmatprep.mubr.msk.f32.mxu1 %vm933_vm0, %v934_v1 }
  0xd6   : > { %688 = vmatmul.mubr.msk.f32.vlgmr.msra.gmra.mrb[0].mxu0 %vm190_vm1, %v338_v19 }
  0xd7   : > { %708 = vmatpush3.bf16.msra.mxu0 %v707_v18  ;;  %694 = vmatprep.mubr.msk.f32.mxu0 %vm933_vm0, %v934_v1 }
  0xda   : > { %681 = vmatmul.mubr.msk.f32.vlgmr.msra.gmra.mrb[0].mxu1 %vm190_vm1, %v179_v20 }
  0xde   : > { %695 = vmatmul.mubr.msk.f32.vlgmr.msra.gmra.mrb[0].mxu0 %vm190_vm1, %v420_v21 }
 0x1ad   : > { %v333_v30 = vpop.f32.mrb[0].mxu1 }
 0x1ae   : > { %v682_v31 = vpop.f32.mrb[1].mxu1 }
 0x1b1   : > { %v496_v33 = vpop.f32.mrb[0].mxu0 }
 0x1b2   : > { %v709_v34 = vadd.f32 %v496_v33, %v333_v30  ;;  %v696_v35 = vpop.f32.mrb[1].mxu0 }
 0x1b4   : > { %v520_v36 = vsel %vm519_vm5, %v709_v34, 0.0  ;;  %v525_v37 = vmul.f32 %v709_v34, %v709_v34 }
 0x1b5   : > { %v522_v38 = vsel %vm521_vm6, %v520_v36, 0.0 }
 0x1b6   : > { %523 = vadd.xlane.f32.xlu1 %v522_v38  ;;  %v526_v39 = vsel %vm519_vm5, %v525_v37, 0.0 }
 0x1b7   : > { %v527_v40 = vsel %vm521_vm6, %v526_v39, 0.0 }
 0x1b8   : > { %528 = vadd.xlane.f32.xlu0 %v527_v40 }
 0x243   : > { %v524_v41 = vpop.xlane.xlu1 %523 }
 0x244   : > { %v530_v42 = vmul.f32 0.015625, %v524_v41 }
 0x245   : > { %v529_v43 = vpop.xlane.xlu0 %528 }
 0x246   : > { %v532_v44 = vmul.f32 %v530_v42, %v530_v42  ;;  %v531_v45 = vmul.f32 0.015625, %v529_v43  ;;  %v535_v49 = vsub.f32 %v709_v34, %v530_v42 }
 0x248   : > { %v533_v46 = vsub.f32 %v531_v45, %v532_v44 }
 0x24a   : > { %v534_v47 = vmax.f32 %v533_v46, 0.0 }
 0x24c   : > { %v536_v48 = vadd.f32 1e-05, %v534_v47 }
 0x24e   : > { %796 = vrsqrt.f32 %v536_v48 }
 0x258   : > { %v797_v50 = vpop.eup %796 }
 0x259   : > { %v538_v51 = vmul.f32 %v797_v50, %v535_v49 }
 0x25b   : > { %vm539_vm7 = vcmp.ge.f32.partialorder %v538_v51, 0.0  ;;  %v540_v52 = vmul.f32 0.2, %v538_v51 }
 0x25d   : > { %v541_v53 = vsel %vm539_vm7, %v538_v51, %v540_v52 }
 0x25e   : > { %542 = vst.msk [vmem:[%s176_s22] sm:$0xff] %vm521_vm6, %v541_v53 }
 0x25f   : > { %869 = shalt.err (!%p866_p7)
}
 0x260   : > { %s870_s26 = scalar_lea.hbm %s1130_s7, 128  ;;  %s874_s30 = scalar_lea.hbm %s1177_s2, 256 }
 0x261   : > { %p871_p9 = scmp.ne.s32.totalorder %s1130_s7, %s870_s26  ;;  %p875_p5 = scmp.lt.u32.totalorder %s1130_s7, %s1177_s2 }
 0x262   : > { %p876_p2 = scmp.lt.u32.totalorder %s874_s30, %s870_s26  ;;  %p878_p4 = scmp.lt.u32.totalorder %s870_s26, %s1130_s7 }
 0x263   : > { %p872_p1 = pnand %p871_p9, %p1048_p12 }
 0x264   : > { %p877_p11 = por %p876_p2, %p875_p5 }
 0x265   : > { %p873_p0 = pneg %p872_p1 }
 0x266   : > { %p879_p6 = por %p878_p4, %p877_p11 }
 0x268   : > { %p880_p8 = pnand %p879_p6, %p873_p0 }
 0x26a   : > { %883 = shalt.err (!%p880_p8)
}
 0x26b   : > { %722 = dma.vmem_to_hbm [thread:$0]  (%p1048_p12), %s1132_s23, 128, %s1130_s7, %s544_s20  }
 0x26c PF: > { %s569_s17 = sand.u32 1, %s914_s9   ;;  %p1192_p10 = scmp.ne.s32.totalorder %s1182_s16, 0 }
 0x26d   : > { %p1193_p13 = scmp.ge.s32.totalorder %s926_s12, 2  ;;  %s570_s4 = scalar_lea.sflag [#allocation4], %s569_s17 }
 0x26f   : > { %p733_p3 = pnand %p1193_p13, %p1192_p10 }
 0x271   : > { %909 = dma.done.wait (!%p733_p3), %s570_s4, 128  }
 0x272   : > { %911 = vsyncadd (!%p733_p3), %s570_s4, 4294967168  ;;  %p16_p7 = scmp.ge.s32.totalorder %s1010_s21, 4   ;;  %s1194_s9 = smov %s918_s10 }
 0x273   : > { %s1195_s10 = smov %s922_s11  ;;  %s1196_s11 = smov %s1044_s8 }
 0x274   : > { %s1197_s12 = smov %s1010_s21  ;;  %18 = sbr.rel (!%p16_p7) target bundleno = 6 (0x6), region = 80 }
 0x27b   :  { %575 = vsyncpa [#allocation3], 1 }
 0x27c   :  { %577 = vsyncpa [#allocation3 + $0x1], 1 }
 0x27d   :  { %578 = vsyncpa [#allocation6], 1 }
 0x27e   :  { %579 = vsyncpa [#allocation4], 1 }
 0x27f   :  { %581 = vsyncpa [#allocation4 + $0x1], 1 }

</bundles_post_ra>
